<compile_context>
chip_gen: v7x
topology: tpu7x:2x2x1
jax: 0.10.0
libtpu: 0.0.40
codegen_flags: <defaults>
</compile_context>

<pallas_src>
import functools

import jax
import jax.numpy as jnp
from jax.experimental import pallas as pl
from jax.experimental.pallas import tpu as pltpu

LANE = 128


def _round_up(x, m):
    return ((x + m - 1) // m) * m


def _vmem_cap_bytes():
    try:
        return int(pltpu.get_tpu_info().vmem_capacity_bytes)
    except Exception:
        return 64 << 20  # conservative: v7x per-TC VMEM


def _vmem_limit(required_bytes, cap):
    # required (double-buffered) block bytes + headroom for compiler scratch,
    # capped at ~75% of physical VMEM (and 100 MiB on 128-MiB parts).
    ceiling = min(int(cap * 3 // 4), 100 << 20)
    return int(min(max(required_bytes + (4 << 20), 16 << 20), ceiling))


# ----------------------------- Pallas kernels --------------------------------

def _xw_kernel(x_ref, w_ref, dinv_ref, o_ref):
    # G = D^{-1/2} * (X @ W)  (first layer only; column scale folded in here)
    h = jnp.dot(x_ref[...], w_ref[...], preferred_element_type=jnp.float32)
    o_ref[...] = (h * dinv_ref[...]).astype(o_ref.dtype)


def _agg_kernel(a_ref, g_ref, b_ref, dinv_ref, *rest,
                tile_k, g_resident, apply_relu, fuse_next_w):
    # acc[m] += (A+I)[m, k-tile] @ G[k-tile]   (int8 A cast to bf16 on VPU)
    # finalize: out = D^{-1/2}_row * acc + b  (+ReLU) (+fused next-layer W, re-scaled)
    if fuse_next_w:
        w_next_ref, o_ref, acc_ref = rest
    else:
        o_ref, acc_ref = rest

    k = pl.program_id(1)

    @pl.when(k == 0)
    def _():
        acc_ref[...] = jnp.zeros_like(acc_ref)

    # int8 -> f32 -> bf16 (explicit two-step cast; exact for small integer counts)
    a = a_ref[...].astype(jnp.float32).astype(jnp.bfloat16)
    if g_resident:
        ks = pl.multiple_of(k * tile_k, tile_k)
        g = g_ref[pl.ds(ks, tile_k), :]
    else:
        g = g_ref[...]
    acc_ref[...] += jnp.dot(a, g, preferred_element_type=jnp.float32)

    @pl.when(k == pl.num_programs(1) - 1)
    def _():
        dinv = dinv_ref[...]                      # (tile_m, 1) f32 row scale
        out = acc_ref[...] * dinv + b_ref[...]
        if apply_relu:
            out = jnp.maximum(out, 0.0)
        if fuse_next_w:
            # fused next-layer feature transform; pre-apply next layer's column scale
            nxt = jnp.dot(out.astype(jnp.bfloat16), w_next_ref[...],
                          preferred_element_type=jnp.float32)
            out = nxt * dinv
        o_ref[...] = out.astype(o_ref.dtype)


# ------------------------------ layer wrappers --------------------------------

def xw_scaled(x, w, dinv_col, *, tile_m, vmem_cap):
    """G = dinv * (x @ w). x: (n_pad, fi_pad) bf16, w: (fi_pad, fo_pad) bf16."""
    n_pad, fi_pad = x.shape
    fo_pad = w.shape[1]
    req = (2 * tile_m * fi_pad * 2 + 2 * fi_pad * fo_pad * 2
           + 2 * tile_m * 4 + 2 * tile_m * fo_pad * 2)
    return pl.pallas_call(
        _xw_kernel,
        out_shape=jax.ShapeDtypeStruct((n_pad, fo_pad), jnp.bfloat16),
        grid_spec=pltpu.PrefetchScalarGridSpec(
            num_scalar_prefetch=0,
            grid=(n_pad // tile_m,),
            in_specs=[
                pl.BlockSpec((tile_m, fi_pad), lambda i: (i, 0)),
                pl.BlockSpec((fi_pad, fo_pad), lambda i: (0, 0)),
                pl.BlockSpec((tile_m, 1), lambda i: (i, 0)),
            ],
            out_specs=pl.BlockSpec((tile_m, fo_pad), lambda i: (i, 0)),
        ),
        compiler_params=pltpu.CompilerParams(
            dimension_semantics=("parallel",),
            vmem_limit_bytes=_vmem_limit(req, vmem_cap),
        ),
        cost_estimate=pl.CostEstimate(
            flops=2 * n_pad * fi_pad * fo_pad,
            transcendentals=0,
            bytes_accessed=n_pad * fi_pad * 2 + fi_pad * fo_pad * 2
            + n_pad * 4 + n_pad * fo_pad * 2,
        ),
    )(x, w, dinv_col)


def aggregate(a_int8, g, b, dinv_col, w_next, *, tile_m, tile_k,
              apply_relu, out_dtype, vmem_cap):
    """out = dinv * ((A+I) @ g) + b (+ReLU) (+fused next-layer W, re-scaled by dinv).
    a_int8: (n_pad, n_pad) int8, g: (n_pad, fo_pad) bf16, b: (fo_pad,) f32."""
    n_pad = a_int8.shape[0]
    fo_pad = g.shape[1]
    out_bytes = jnp.dtype(out_dtype).itemsize
    fuse_next_w = w_next is not None

    # conservative double-buffered VMEM accounting for the per-step blocks
    base = (2 * tile_m * tile_k * 1            # int8 A tiles
            + 2 * tile_m * fo_pad * out_bytes  # output tiles
            + tile_m * fo_pad * 4              # f32 accumulator
            + 2 * tile_m * 4 + 2 * fo_pad * 4  # dinv + bias
            + (2 * fo_pad * fo_pad * 2 if fuse_next_w else 0))
    g_bytes = n_pad * fo_pad * 2
    budget = min(int(vmem_cap * 3 // 4) - (8 << 20), 40 << 20)
    g_resident = (base + 2 * g_bytes) <= budget

    if g_resident:
        # whole G stays resident in VMEM (constant block index -> fetched once)
        g_spec = pl.BlockSpec((n_pad, fo_pad), lambda m, k: (0, 0))
        g_alloc = 2 * g_bytes
        g_stream = g_bytes
    else:
        g_spec = pl.BlockSpec((tile_k, fo_pad), lambda m, k: (k, 0))
        g_alloc = 2 * tile_k * fo_pad * 2
        g_stream = (n_pad // tile_m) * n_pad * fo_pad * 2

    in_specs = [
        pl.BlockSpec((tile_m, tile_k), lambda m, k: (m, k)),
        g_spec,
        pl.BlockSpec((1, fo_pad), lambda m, k: (0, 0)),
        pl.BlockSpec((tile_m, 1), lambda m, k: (m, 0)),
    ]
    args = [a_int8, g, b.reshape(1, fo_pad).astype(jnp.float32), dinv_col]
    if fuse_next_w:
        in_specs.append(pl.BlockSpec((fo_pad, fo_pad), lambda m, k: (0, 0)))
        args.append(w_next)

    kernel = functools.partial(_agg_kernel, tile_k=tile_k, g_resident=g_resident,
                               apply_relu=apply_relu, fuse_next_w=fuse_next_w)
    flops = 2 * n_pad * n_pad * fo_pad
    if fuse_next_w:
        flops += 2 * n_pad * fo_pad * fo_pad

    return pl.pallas_call(
        kernel,
        out_shape=jax.ShapeDtypeStruct((n_pad, fo_pad), out_dtype),
        grid_spec=pltpu.PrefetchScalarGridSpec(
            num_scalar_prefetch=0,
            grid=(n_pad // tile_m, n_pad // tile_k),
            in_specs=in_specs,
            out_specs=pl.BlockSpec((tile_m, fo_pad), lambda m, k: (m, 0)),
            scratch_shapes=[pltpu.VMEM((tile_m, fo_pad), jnp.float32)],
        ),
        compiler_params=pltpu.CompilerParams(
            dimension_semantics=("parallel", "arbitrary"),
            vmem_limit_bytes=_vmem_limit(base + g_alloc, vmem_cap),
        ),
        cost_estimate=pl.CostEstimate(
            flops=flops,
            transcendentals=0,
            bytes_accessed=n_pad * n_pad * 1 + g_stream + n_pad * 4 + fo_pad * 4
            + (fo_pad * fo_pad * 2 if fuse_next_w else 0)
            + n_pad * fo_pad * out_bytes,
        ),
    )(*args)


# ------------------------------ JAX glue ---------------------------------------

def build_graph_operators(edge_index, num_nodes):
    """A+I as int8 multiplicities plus D^{-1/2}, matching PyG gcn_norm with unit edge
    weights: scatter-add duplicate edges, drop pre-existing self-loops, add one unit
    self-loop per node, in-degree (per-dst) symmetric normalization."""
    src, dst = edge_index[0], edge_index[1]
    w = jnp.where(src != dst, 1.0, 0.0).astype(jnp.float32)   # keep non-self-loop edges
    a = jnp.zeros((num_nodes, num_nodes), jnp.float32).at[dst, src].add(w)
    diag = jnp.arange(num_nodes)
    a = a.at[diag, diag].add(1.0)                             # one unit self-loop per node
    deg = a.sum(axis=1)
    dinv = jnp.where(deg > 0.0, jax.lax.rsqrt(deg), 0.0)
    # TODO(synk): int8 assumes per-edge multiplicity < 128; widen/clamp for heavy multigraphs.
    return a.astype(jnp.int8), dinv


def glorot(key, shape):
    fan_in, fan_out = shape
    limit = jnp.sqrt(6.0 / (fan_in + fan_out))
    return jax.random.uniform(key, shape, jnp.float32, -limit, limit)


def init_gae_encoder_params(key, input_dim, hidden_dim=64, num_layers=3):
    # GAEEncoder layer widths: in->hid, (num_layers-2) x hid->hid, hid->hid
    dims = [input_dim] + [hidden_dim] * num_layers
    params = []
    for i in range(num_layers):
        key, wk = jax.random.split(key)
        w = glorot(wk, (dims[i], dims[i + 1]))
        b = jnp.zeros((dims[i + 1],), jnp.float32)  # GCNConv bias init = zeros
        params.append((w, b))
    return params


def _pad2(x, rows, cols, dtype):
    x = x.astype(dtype)
    return jnp.pad(x, ((0, rows - x.shape[0]), (0, cols - x.shape[1])))


def _choose_tiling(n):
    # big tiles (review: 256-> ~63%, 512 -> ~85%, 1024 -> ~86% of HBM roofline)
    if n <= 512:
        n_pad = _round_up(max(n, 128), 128)
        return n_pad, n_pad, n_pad
    if n <= 4096:
        n_pad = _round_up(n, 512)
        return n_pad, 512, 512
    if n <= 16384:
        n_pad = _round_up(n, 1024)
        return n_pad, 1024, 1024
    n_pad = _round_up(n, 2048)
    return n_pad, 1024, 2048


def gae_encoder_forward(x, edge_index, params):
    n, f_in = x.shape
    hidden_dim = params[-1][0].shape[1]
    num_layers = len(params)

    n_pad, tile_m, tile_k = _choose_tiling(n)
    fi_pad = _round_up(f_in, LANE)
    fh_pad = _round_up(hidden_dim, LANE)
    vmem_cap = _vmem_cap_bytes()

    a_int8, dinv = build_graph_operators(edge_index, n)
    a_int8 = _pad2(a_int8, n_pad, n_pad, jnp.int8)
    dinv_col = jnp.pad(dinv, (0, n_pad - n)).astype(jnp.float32).reshape(n_pad, 1)

    x_pad = _pad2(x, n_pad, fi_pad, jnp.bfloat16)

    w_pads, b_pads = [], []
    for i, (w, b) in enumerate(params):
        rows = fi_pad if i == 0 else fh_pad
        w_pads.append(_pad2(w, rows, fh_pad, jnp.bfloat16))
        b_pads.append(jnp.pad(b, (0, fh_pad - b.shape[0])).astype(jnp.float32))

    # layer-0 feature transform (only standalone XW call; D^{-1/2} column scale folded in)
    g = xw_scaled(x_pad, w_pads[0], dinv_col, tile_m=tile_m, vmem_cap=vmem_cap)

    for i in range(num_layers):
        last = i == num_layers - 1
        g = aggregate(
            a_int8, g, b_pads[i], dinv_col,
            None if last else w_pads[i + 1],      # fuse next layer's XW into finalize
            tile_m=tile_m, tile_k=tile_k,
            apply_relu=not last,
            out_dtype=jnp.float32 if last else jnp.bfloat16,
            vmem_cap=vmem_cap,
        )
        # F.dropout(p=0.2, training=False) -> identity in eval mode
    return g[:n, :hidden_dim]


# pure-JAX reference mirroring the kernel's folded-scale / bf16 mixed precision
def reference_forward(x, edge_index, params):
    n = x.shape[0]
    a_int8, dinv = build_graph_operators(edge_index, n)
    a = a_int8.astype(jnp.bfloat16)
    dinv = dinv.astype(jnp.float32)[:, None]
    num_layers = len(params)
    g = (jnp.dot(x.astype(jnp.bfloat16), params[0][0].astype(jnp.bfloat16),
                 preferred_element_type=jnp.float32) * dinv).astype(jnp.bfloat16)
    out = None
    for i, (w, b) in enumerate(params):
        last = i == num_layers - 1
        out = jnp.dot(a, g, preferred_element_type=jnp.float32) * dinv + b
        if last:
            break
        out = jnp.maximum(out, 0.0)
        w_next = params[i + 1][0].astype(jnp.bfloat16)
        g = (jnp.dot(out.astype(jnp.bfloat16), w_next,
                     preferred_element_type=jnp.float32) * dinv).astype(jnp.bfloat16)
    return out


# ------------------------------- driver ---------------------------------------

if __name__ == "__main__":
    key = jax.random.PRNGKey(0)
    num_nodes, input_dim, hidden_dim, num_layers = 16, 8, 32, 3

    kx, kp = jax.random.split(key)
    x = jax.random.normal(kx, (num_nodes, input_dim), jnp.float32)

    # deterministic ring graph (both directions), shape [2, E]
    idx = jnp.arange(num_nodes)
    src = jnp.concatenate([idx, (idx + 1) % num_nodes])
    dst = jnp.concatenate([(idx + 1) % num_nodes, idx])
    edge_index = jnp.stack([src, dst], axis=0)

    params = init_gae_encoder_params(kp, input_dim, hidden_dim, num_layers)

    out = jax.jit(gae_encoder_forward)(x, edge_index, params)
    out = jax.block_until_ready(out)
    assert out.shape == (num_nodes, hidden_dim)
    assert bool(jnp.all(jnp.isfinite(out)))

    ref = reference_forward(x, edge_index, params)
    err = float(jnp.max(jnp.abs(out - ref)))
    assert err < 2e-2, f"max abs error {err}"

    print("KERNEL_OK")
</pallas_src>

<mosaic_0001>
module attributes {stable_mosaic.version = 11 : i64} {
  func.func private @main(%arg0: i32) attributes {dimension_semantics = [#tpu.dimension_semantics<core_parallel>], iteration_bounds = array<i64: 2>, tpu.core_type = #tpu.core_type<sc_scalar_subcore>, window_params = []} {
    return
  }
}

module attributes {stable_mosaic.version = 11 : i64} {
  func.func private @main(%arg0: i32) attributes {dimension_semantics = [#tpu.dimension_semantics<core_parallel>], iteration_bounds = array<i64: 2>, tpu.core_type = #tpu.core_type<sc_scalar_subcore>, window_params = []} {
    return
  }
}

module attributes {stable_mosaic.version = 11 : i64} {
  func.func @_xw_kernel(%arg0: i32, %arg1: memref<128x128xbf16, #tpu.memory_space<vmem>>, %arg2: memref<128x128xbf16, #tpu.memory_space<vmem>>, %arg3: memref<128x1xf32, #tpu.memory_space<vmem>>, %arg4: memref<128x128xbf16, #tpu.memory_space<vmem>>) attributes {dimension_semantics = [#tpu.dimension_semantics<parallel>], iteration_bounds = array<i64: 1>, scalar_prefetch = 0 : i64, scratch_operands = 0 : i64, tpu.core_type = #tpu.core_type<tc>, window_params = [{transform_indices = @transform_0, window_bounds = array<i64: 128, 128>}, {pipeline_mode = #tpu.pipeline_mode<synchronous>, transform_indices = @transform_1, window_bounds = array<i64: 128, 128>}, {transform_indices = @transform_2, window_bounds = array<i64: 128, 1>}, {transform_indices = @transform_3, window_bounds = array<i64: 128, 128>}]} {
    %c0 = arith.constant 0 : index
    %c0_0 = arith.constant 0 : index
    %0 = vector.load %arg1[%c0, %c0_0] : memref<128x128xbf16, #tpu.memory_space<vmem>>, vector<128x128xbf16>
    %c0_1 = arith.constant 0 : index
    %c0_2 = arith.constant 0 : index
    %1 = vector.load %arg2[%c0_1, %c0_2] : memref<128x128xbf16, #tpu.memory_space<vmem>>, vector<128x128xbf16>
    %cst = arith.constant dense<0.000000e+00> : vector<128x128xf32>
    %2 = tpu.matmul %0, %1, %cst {dimension_numbers = #tpu.dot_dimension_numbers<[1], [0], [0], [1], [0, 0, 1, 1], [], []>} : vector<128x128xbf16>, vector<128x128xbf16>, vector<128x128xf32> -> vector<128x128xf32>
    %c0_3 = arith.constant 0 : index
    %c0_4 = arith.constant 0 : index
    %3 = vector.load %arg3[%c0_3, %c0_4] : memref<128x1xf32, #tpu.memory_space<vmem>>, vector<128x1xf32>
    %4 = vector.broadcast %3 : vector<128x1xf32> to vector<128x128xf32>
    %5 = arith.mulf %2, %4 : vector<128x128xf32>
    %6 = arith.truncf %5 : vector<128x128xf32> to vector<128x128xbf16>
    %c0_5 = arith.constant 0 : index
    %c0_6 = arith.constant 0 : index
    %7 = vector.load %arg4[%c0_5, %c0_6] : memref<128x128xbf16, #tpu.memory_space<vmem>>, vector<128x128xbf16>
    tpu.vector_store %arg4[%c0_5, %c0_6], %6 {strides = array<i32>} : memref<128x128xbf16, #tpu.memory_space<vmem>>, vector<128x128xbf16>,
    return
  }
  func.func @transform_0(%arg0: i32) -> (i32, i32) {
    %c0_i32 = arith.constant 0 : i32
    %c0_i32_0 = arith.constant 0 : i32
    return %arg0, %c0_i32 : i32, i32
  }
  func.func @transform_1(%arg0: i32) -> (i32, i32) {
    %c0_i32 = arith.constant 0 : i32
    %c0_i32_0 = arith.constant 0 : i32
    %c0_i32_1 = arith.constant 0 : i32
    return %c0_i32, %c0_i32_0 : i32, i32
  }
  func.func @transform_2(%arg0: i32) -> (i32, i32) {
    %c0_i32 = arith.constant 0 : i32
    %c0_i32_0 = arith.constant 0 : i32
    return %arg0, %c0_i32 : i32, i32
  }
  func.func @transform_3(%arg0: i32) -> (i32, i32) {
    %c0_i32 = arith.constant 0 : i32
    %c0_i32_0 = arith.constant 0 : i32
    return %arg0, %c0_i32 : i32, i32
  }
}

module attributes {stable_mosaic.version = 11 : i64} {
  func.func @_agg_kernel(%arg0: i32, %arg1: i32, %arg2: memref<128x128xi8, #tpu.memory_space<vmem>>, %arg3: memref<128x128xbf16, #tpu.memory_space<vmem>>, %arg4: memref<1x128xf32, #tpu.memory_space<vmem>>, %arg5: memref<128x1xf32, #tpu.memory_space<vmem>>, %arg6: memref<128x128xbf16, #tpu.memory_space<vmem>>, %arg7: memref<128x128xbf16, #tpu.memory_space<vmem>>, %arg8: memref<128x128xf32, #tpu.memory_space<vmem>>) attributes {dimension_semantics = [#tpu.dimension_semantics<parallel>, #tpu.dimension_semantics<arbitrary>], iteration_bounds = array<i64: 1, 1>, scalar_prefetch = 0 : i64, scratch_operands = 1 : i64, tpu.core_type = #tpu.core_type<tc>, window_params = [{transform_indices = @transform_0, window_bounds = array<i64: 128, 128>}, {pipeline_mode = #tpu.pipeline_mode<synchronous>, transform_indices = @transform_1, window_bounds = array<i64: 128, 128>}, {pipeline_mode = #tpu.pipeline_mode<synchronous>, transform_indices = @transform_2, window_bounds = array<i64: 1, 128>}, {transform_indices = @transform_3, window_bounds = array<i64: 128, 1>}, {pipeline_mode = #tpu.pipeline_mode<synchronous>, transform_indices = @transform_4, window_bounds = array<i64: 128, 128>}, {transform_indices = @transform_5, window_bounds = array<i64: 128, 128>}]} {
    %c0_i32 = arith.constant 0 : i32
    %0 = arith.cmpi eq, %arg1, %c0_i32 : i32
    %1 = arith.extui %0 : i1 to i32
    %c0_i32_0 = arith.constant 0 : i32
    %2 = arith.cmpi ne, %1, %c0_i32_0 : i32
    scf.if %2 {
      %cst_9 = arith.constant 0.000000e+00 : f32
      %17 = vector.broadcast %cst_9 : f32 to vector<128x128xf32>
      %c0_10 = arith.constant 0 : index
      %c0_11 = arith.constant 0 : index
      %18 = vector.load %arg8[%c0_10, %c0_11] : memref<128x128xf32, #tpu.memory_space<vmem>>, vector<128x128xf32>
      tpu.vector_store %arg8[%c0_10, %c0_11], %17 {strides = array<i32>} : memref<128x128xf32, #tpu.memory_space<vmem>>, vector<128x128xf32>,
    } else {
    }
    %c0 = arith.constant 0 : index
    %c0_1 = arith.constant 0 : index
    %3 = vector.load %arg2[%c0, %c0_1] : memref<128x128xi8, #tpu.memory_space<vmem>>, vector<128x128xi8>
    %4 = arith.sitofp %3 : vector<128x128xi8> to vector<128x128xf32>
    %5 = arith.truncf %4 : vector<128x128xf32> to vector<128x128xbf16>
    %c128_i32 = arith.constant 128 : i32
    %6 = arith.muli %arg1, %c128_i32 : i32
    %7 = tpu.assume_multiple %6, 128 : i32
    %8 = arith.index_cast %7 : i32 to index
    %c0_2 = arith.constant 0 : index
    %9 = vector.load %arg3[%8, %c0_2] : memref<128x128xbf16, #tpu.memory_space<vmem>>, vector<128x128xbf16>
    %c0_3 = arith.constant 0 : index
    %c0_4 = arith.constant 0 : index
    %10 = vector.load %arg8[%c0_3, %c0_4] : memref<128x128xf32, #tpu.memory_space<vmem>>, vector<128x128xf32>
    %cst = arith.constant dense<0.000000e+00> : vector<128x128xf32>
    %11 = tpu.matmul %5, %9, %cst {dimension_numbers = #tpu.dot_dimension_numbers<[1], [0], [0], [1], [0, 0, 1, 1], [], []>} : vector<128x128xbf16>, vector<128x128xbf16>, vector<128x128xf32> -> vector<128x128xf32>
    %12 = arith.addf %10, %11 : vector<128x128xf32>
    %c0_5 = arith.constant 0 : index
    %c0_6 = arith.constant 0 : index
    %13 = vector.load %arg8[%c0_5, %c0_6] : memref<128x128xf32, #tpu.memory_space<vmem>>, vector<128x128xf32>
    tpu.vector_store %arg8[%c0_5, %c0_6], %12 {strides = array<i32>} : memref<128x128xf32, #tpu.memory_space<vmem>>, vector<128x128xf32>,
    %c0_i32_7 = arith.constant 0 : i32
    %14 = arith.cmpi eq, %arg1, %c0_i32_7 : i32
    %15 = arith.extui %14 : i1 to i32
    %c0_i32_8 = arith.constant 0 : i32
    %16 = arith.cmpi ne, %15, %c0_i32_8 : i32
    scf.if %16 {
      %c0_9 = arith.constant 0 : index
      %c0_10 = arith.constant 0 : index
      %17 = vector.load %arg5[%c0_9, %c0_10] : memref<128x1xf32, #tpu.memory_space<vmem>>, vector<128x1xf32>
      %c0_11 = arith.constant 0 : index
      %c0_12 = arith.constant 0 : index
      %18 = vector.load %arg8[%c0_11, %c0_12] : memref<128x128xf32, #tpu.memory_space<vmem>>, vector<128x128xf32>
      %19 = vector.broadcast %17 : vector<128x1xf32> to vector<128x128xf32>
      %20 = arith.mulf %18, %19 : vector<128x128xf32>
      %c0_13 = arith.constant 0 : index
      %c0_14 = arith.constant 0 : index
      %21 = vector.load %arg4[%c0_13, %c0_14] : memref<1x128xf32, #tpu.memory_space<vmem>>, vector<1x128xf32>
      %22 = vector.broadcast %21 : vector<1x128xf32> to vector<128x128xf32>
      %23 = arith.addf %20, %22 : vector<128x128xf32>
      %cst_15 = arith.constant 0.000000e+00 : f32
      %24 = vector.broadcast %cst_15 : f32 to vector<128x128xf32>
      %25 = arith.maximumf %23, %24 : vector<128x128xf32>
      %26 = arith.truncf %25 : vector<128x128xf32> to vector<128x128xbf16>
      %c0_16 = arith.constant 0 : index
      %c0_17 = arith.constant 0 : index
      %27 = vector.load %arg6[%c0_16, %c0_17] : memref<128x128xbf16, #tpu.memory_space<vmem>>, vector<128x128xbf16>
      %cst_18 = arith.constant dense<0.000000e+00> : vector<128x128xf32>
      %28 = tpu.matmul %26, %27, %cst_18 {dimension_numbers = #tpu.dot_dimension_numbers<[1], [0], [0], [1], [0, 0, 1, 1], [], []>} : vector<128x128xbf16>, vector<128x128xbf16>, vector<128x128xf32> -> vector<128x128xf32>
      %29 = vector.broadcast %17 : vector<128x1xf32> to vector<128x128xf32>
      %30 = arith.mulf %28, %29 : vector<128x128xf32>
      %31 = arith.truncf %30 : vector<128x128xf32> to vector<128x128xbf16>
      %c0_19 = arith.constant 0 : index
      %c0_20 = arith.constant 0 : index
      %32 = vector.load %arg7[%c0_19, %c0_20] : memref<128x128xbf16, #tpu.memory_space<vmem>>, vector<128x128xbf16>
      tpu.vector_store %arg7[%c0_19, %c0_20], %31 {strides = array<i32>} : memref<128x128xbf16, #tpu.memory_space<vmem>>, vector<128x128xbf16>,
    } else {
    }
    return
  }
  func.func @transform_0(%arg0: i32, %arg1: i32) -> (i32, i32) {
    %c0_i32 = arith.constant 0 : i32
    return %arg0, %arg1 : i32, i32
  }
  func.func @transform_1(%arg0: i32, %arg1: i32) -> (i32, i32) {
    %c0_i32 = arith.constant 0 : i32
    %c0_i32_0 = arith.constant 0 : i32
    %c0_i32_1 = arith.constant 0 : i32
    return %c0_i32, %c0_i32_0 : i32, i32
  }
  func.func @transform_2(%arg0: i32, %arg1: i32) -> (i32, i32) {
    %c0_i32 = arith.constant 0 : i32
    %c0_i32_0 = arith.constant 0 : i32
    %c0_i32_1 = arith.constant 0 : i32
    return %c0_i32, %c0_i32_0 : i32, i32
  }
  func.func @transform_3(%arg0: i32, %arg1: i32) -> (i32, i32) {
    %c0_i32 = arith.constant 0 : i32
    %c0_i32_0 = arith.constant 0 : i32
    return %arg0, %c0_i32 : i32, i32
  }
  func.func @transform_4(%arg0: i32, %arg1: i32) -> (i32, i32) {
    %c0_i32 = arith.constant 0 : i32
    %c0_i32_0 = arith.constant 0 : i32
    %c0_i32_1 = arith.constant 0 : i32
    return %c0_i32, %c0_i32_0 : i32, i32
  }
  func.func @transform_5(%arg0: i32, %arg1: i32) -> (i32, i32) {
    %c0_i32 = arith.constant 0 : i32
    %c0_i32_0 = arith.constant 0 : i32
    return %arg0, %c0_i32 : i32, i32
  }
}

module attributes {stable_mosaic.version = 11 : i64} {
  func.func @_agg_kernel(%arg0: i32, %arg1: i32, %arg2: memref<128x128xi8, #tpu.memory_space<vmem>>, %arg3: memref<128x128xbf16, #tpu.memory_space<vmem>>, %arg4: memref<1x128xf32, #tpu.memory_space<vmem>>, %arg5: memref<128x1xf32, #tpu.memory_space<vmem>>, %arg6: memref<128x128xf32, #tpu.memory_space<vmem>>, %arg7: memref<128x128xf32, #tpu.memory_space<vmem>>) attributes {dimension_semantics = [#tpu.dimension_semantics<parallel>, #tpu.dimension_semantics<arbitrary>], iteration_bounds = array<i64: 1, 1>, scalar_prefetch = 0 : i64, scratch_operands = 1 : i64, tpu.core_type = #tpu.core_type<tc>, window_params = [{transform_indices = @transform_0, window_bounds = array<i64: 128, 128>}, {pipeline_mode = #tpu.pipeline_mode<synchronous>, transform_indices = @transform_1, window_bounds = array<i64: 128, 128>}, {pipeline_mode = #tpu.pipeline_mode<synchronous>, transform_indices = @transform_2, window_bounds = array<i64: 1, 128>}, {transform_indices = @transform_3, window_bounds = array<i64: 128, 1>}, {transform_indices = @transform_4, window_bounds = array<i64: 128, 128>}]} {
    %c0_i32 = arith.constant 0 : i32
    %0 = arith.cmpi eq, %arg1, %c0_i32 : i32
    %1 = arith.extui %0 : i1 to i32
    %c0_i32_0 = arith.constant 0 : i32
    %2 = arith.cmpi ne, %1, %c0_i32_0 : i32
    scf.if %2 {
      %cst_9 = arith.constant 0.000000e+00 : f32
      %17 = vector.broadcast %cst_9 : f32 to vector<128x128xf32>
      %c0_10 = arith.constant 0 : index
      %c0_11 = arith.constant 0 : index
      %18 = vector.load %arg7[%c0_10, %c0_11] : memref<128x128xf32, #tpu.memory_space<vmem>>, vector<128x128xf32>
      tpu.vector_store %arg7[%c0_10, %c0_11], %17 {strides = array<i32>} : memref<128x128xf32, #tpu.memory_space<vmem>>, vector<128x128xf32>,
    } else {
    }
    %c0 = arith.constant 0 : index
    %c0_1 = arith.constant 0 : index
    %3 = vector.load %arg2[%c0, %c0_1] : memref<128x128xi8, #tpu.memory_space<vmem>>, vector<128x128xi8>
    %4 = arith.sitofp %3 : vector<128x128xi8> to vector<128x128xf32>
    %5 = arith.truncf %4 : vector<128x128xf32> to vector<128x128xbf16>
    %c128_i32 = arith.constant 128 : i32
    %6 = arith.muli %arg1, %c128_i32 : i32
    %7 = tpu.assume_multiple %6, 128 : i32
    %8 = arith.index_cast %7 : i32 to index
    %c0_2 = arith.constant 0 : index
    %9 = vector.load %arg3[%8, %c0_2] : memref<128x128xbf16, #tpu.memory_space<vmem>>, vector<128x128xbf16>
    %c0_3 = arith.constant 0 : index
    %c0_4 = arith.constant 0 : index
    %10 = vector.load %arg7[%c0_3, %c0_4] : memref<128x128xf32, #tpu.memory_space<vmem>>, vector<128x128xf32>
    %cst = arith.constant dense<0.000000e+00> : vector<128x128xf32>
    %11 = tpu.matmul %5, %9, %cst {dimension_numbers = #tpu.dot_dimension_numbers<[1], [0], [0], [1], [0, 0, 1, 1], [], []>} : vector<128x128xbf16>, vector<128x128xbf16>, vector<128x128xf32> -> vector<128x128xf32>
    %12 = arith.addf %10, %11 : vector<128x128xf32>
    %c0_5 = arith.constant 0 : index
    %c0_6 = arith.constant 0 : index
    %13 = vector.load %arg7[%c0_5, %c0_6] : memref<128x128xf32, #tpu.memory_space<vmem>>, vector<128x128xf32>
    tpu.vector_store %arg7[%c0_5, %c0_6], %12 {strides = array<i32>} : memref<128x128xf32, #tpu.memory_space<vmem>>, vector<128x128xf32>,
    %c0_i32_7 = arith.constant 0 : i32
    %14 = arith.cmpi eq, %arg1, %c0_i32_7 : i32
    %15 = arith.extui %14 : i1 to i32
    %c0_i32_8 = arith.constant 0 : i32
    %16 = arith.cmpi ne, %15, %c0_i32_8 : i32
    scf.if %16 {
      %c0_9 = arith.constant 0 : index
      %c0_10 = arith.constant 0 : index
      %17 = vector.load %arg5[%c0_9, %c0_10] : memref<128x1xf32, #tpu.memory_space<vmem>>, vector<128x1xf32>
      %c0_11 = arith.constant 0 : index
      %c0_12 = arith.constant 0 : index
      %18 = vector.load %arg7[%c0_11, %c0_12] : memref<128x128xf32, #tpu.memory_space<vmem>>, vector<128x128xf32>
      %19 = vector.broadcast %17 : vector<128x1xf32> to vector<128x128xf32>
      %20 = arith.mulf %18, %19 : vector<128x128xf32>
      %c0_13 = arith.constant 0 : index
      %c0_14 = arith.constant 0 : index
      %21 = vector.load %arg4[%c0_13, %c0_14] : memref<1x128xf32, #tpu.memory_space<vmem>>, vector<1x128xf32>
      %22 = vector.broadcast %21 : vector<1x128xf32> to vector<128x128xf32>
      %23 = arith.addf %20, %22 : vector<128x128xf32>
      %c0_15 = arith.constant 0 : index
      %c0_16 = arith.constant 0 : index
      %24 = vector.load %arg6[%c0_15, %c0_16] : memref<128x128xf32, #tpu.memory_space<vmem>>, vector<128x128xf32>
      tpu.vector_store %arg6[%c0_15, %c0_16], %23 {strides = array<i32>} : memref<128x128xf32, #tpu.memory_space<vmem>>, vector<128x128xf32>,
    } else {
    }
    return
  }
  func.func @transform_0(%arg0: i32, %arg1: i32) -> (i32, i32) {
    %c0_i32 = arith.constant 0 : i32
    return %arg0, %arg1 : i32, i32
  }
  func.func @transform_1(%arg0: i32, %arg1: i32) -> (i32, i32) {
    %c0_i32 = arith.constant 0 : i32
    %c0_i32_0 = arith.constant 0 : i32
    %c0_i32_1 = arith.constant 0 : i32
    return %c0_i32, %c0_i32_0 : i32, i32
  }
  func.func @transform_2(%arg0: i32, %arg1: i32) -> (i32, i32) {
    %c0_i32 = arith.constant 0 : i32
    %c0_i32_0 = arith.constant 0 : i32
    %c0_i32_1 = arith.constant 0 : i32
    return %c0_i32, %c0_i32_0 : i32, i32
  }
  func.func @transform_3(%arg0: i32, %arg1: i32) -> (i32, i32) {
    %c0_i32 = arith.constant 0 : i32
    %c0_i32_0 = arith.constant 0 : i32
    return %arg0, %c0_i32 : i32, i32
  }
  func.func @transform_4(%arg0: i32, %arg1: i32) -> (i32, i32) {
    %c0_i32 = arith.constant 0 : i32
    %c0_i32_0 = arith.constant 0 : i32
    return %arg0, %c0_i32 : i32, i32
  }
}

</mosaic_0001>

<bundles_post_ra>
// kernel: gae_encoder_forward.4
= control target key start
LH: loop header
LB: loop body
LE: loop exit
PB: predicated region body
PF: predicated region fallthrough
CT: control target
= control target key end

     0   :  { %v614_v1 = vmov 0   ;;  %s755_s1 = inlined_call_operand.vmem [shape: bf16[128,128], index: 1, kind: input, shape index: {}]   ;;  %s756_s0 = inlined_call_operand.vmem [shape: bf16[128,128], index: 0, kind: input, shape index: {}]   ;;  %s757_s2 = inlined_call_operand.vmem [shape: f32[128,1], index: 2, kind: input, shape index: {}]   ;;  %s758_s3 = inlined_call_operand.vmem [shape: bf16[128,128], index: 3, kind: output, shape index: {}]  }
   0x1   :  { %v598_v0 = vld [vmem:[%s755_s1] sm:$0xff]   ;;  %597 = vset.pattern.permute.xlu1 %v614_v1  ;;  %596 = vset.pattern.permute.xlu0 %v614_v1  ;;  %v599_v2 = vld [vmem:[%s755_s1 + $0x8] sm:$0xff]   ;;  %v600_v3 = vld [vmem:[%s755_s1 + $0x10] sm:$0xff]  }
   0x2   :  { %547 = vmatprep.subr.bf16.mxu0 %v598_v0  ;;  %579 = vmatprep.subr.bf16.mxu1 %v598_v0  ;;  %v601_v4 = vld [vmem:[%s755_s1 + $0x18] sm:$0xff]   ;;  %v606_v5 = vld [vmem:[%s756_s0] sm:$0xff]   ;;  %v603_v8 = vld [vmem:[%s755_s1 + $0x28] sm:$0xff]  }
   0x3   :  { %548 = vmatpush3.bf16.msra.mxu0 %v598_v0  ;;  %587 = vmatpush3.bf16.msra.mxu1 %v598_v0  ;;  %v607_v6 = vld [vmem:[%s756_s0 + $0x20] sm:$0xff]   ;;  %v242_v9 = vld [vmem:[%s757_s2 + $0x10] sm:$0xff]  ;;  %v243_v11 = vld [vmem:[%s757_s2 + $0x18] sm:$0xff] }
   0x4   :  { %549 = vmatprep.subr.bf16.mxu0 %v599_v2  ;;  %580 = vmatprep.subr.bf16.mxu1 %v599_v2  ;;  %v602_v7 = vld [vmem:[%s755_s1 + $0x20] sm:$0xff]   ;;  %v241_v12 = vld [vmem:[%s757_s2 + $0x8] sm:$0xff]  ;;  %v604_v13 = vld [vmem:[%s755_s1 + $0x30] sm:$0xff]  }
   0x5   :  { %563 = vmatprep.mubr.bf16.mxu0 %v606_v5  ;;  %571 = vmatprep.mubr.bf16.mxu1 %v607_v6  ;;  %v240_v10 = vld [vmem:[%s757_s2] sm:$0xff]  ;;  %v245_v14 = vld [vmem:[%s757_s2 + $0x28] sm:$0xff]  ;;  %v605_v16 = vld [vmem:[%s755_s1 + $0x38] sm:$0xff]  }
   0x6   :  { %268 = vperm.xlu1 %597, %v242_v9   ;;  %258 = vperm.xlu0 %596, %v240_v10   ;;  %v244_v15 = vld [vmem:[%s757_s2 + $0x20] sm:$0xff]  ;;  %v247_v17 = vld [vmem:[%s757_s2 + $0x38] sm:$0xff]  ;;  %v246_v18 = vld [vmem:[%s757_s2 + $0x30] sm:$0xff] }
   0x7   :  { %550 = vmatpush3.bf16.msra.mxu0 %v599_v2  ;;  %588 = vmatpush3.bf16.msra.mxu1 %v599_v2  ;;  %v608_v19 = vld [vmem:[%s756_s0 + $0x8] sm:$0xff]   ;;  %v248_v22 = vld [vmem:[%s757_s2 + $0x40] sm:$0xff]  ;;  %v610_v23 = vld [vmem:[%s756_s0 + $0x10] sm:$0xff]  }
   0x8   :  { %551 = vmatprep.subr.bf16.mxu0 %v600_v3  ;;  %581 = vmatprep.subr.bf16.mxu1 %v600_v3  ;;  %v609_v20 = vld [vmem:[%s756_s0 + $0x28] sm:$0xff]   ;;  %v611_v24 = vld [vmem:[%s756_s0 + $0x30] sm:$0xff]   ;;  %v251_v25 = vld [vmem:[%s757_s2 + $0x58] sm:$0xff] }
   0x9   :  { %v249_v21 = vld [vmem:[%s757_s2 + $0x48] sm:$0xff]  ;;  %v250_v26 = vld [vmem:[%s757_s2 + $0x50] sm:$0xff]  ;;  %v612_v27 = vld [vmem:[%s756_s0 + $0x18] sm:$0xff]  }
   0xa   :  { %273 = vperm.xlu1 %597, %v243_v11   ;;  %263 = vperm.xlu0 %596, %v241_v12   ;;  %v613_v28 = vld [vmem:[%s756_s0 + $0x38] sm:$0xff]   ;;  %v253_v29 = vld [vmem:[%s757_s2 + $0x68] sm:$0xff]  ;;  %v252_v30 = vld [vmem:[%s757_s2 + $0x60] sm:$0xff] }
   0xb   :  { %552 = vmatpush3.bf16.msra.mxu0 %v600_v3  ;;  %589 = vmatpush3.bf16.msra.mxu1 %v600_v3  ;;  %v255_v31 = vld [vmem:[%s757_s2 + $0x78] sm:$0xff]  ;;  %v254_v32 = vld [vmem:[%s757_s2 + $0x70] sm:$0xff] }
   0xc   :  { %553 = vmatprep.subr.bf16.mxu0 %v601_v4  ;;  %582 = vmatprep.subr.bf16.mxu1 %v601_v4 }
   0xe   :  { %283 = vperm.xlu1 %597, %v245_v14   ;;  %278 = vperm.xlu0 %596, %v244_v15  }
   0xf   :  { %554 = vmatpush3.bf16.msra.mxu0 %v601_v4  ;;  %590 = vmatpush3.bf16.msra.mxu1 %v601_v4 }
  0x10   :  { %555 = vmatprep.subr.bf16.mxu0 %v602_v7  ;;  %583 = vmatprep.subr.bf16.mxu1 %v602_v7 }
  0x12   :  { %293 = vperm.xlu1 %597, %v247_v17   ;;  %288 = vperm.xlu0 %596, %v246_v18  }
  0x13   :  { %556 = vmatpush3.bf16.msra.mxu0 %v602_v7  ;;  %591 = vmatpush3.bf16.msra.mxu1 %v602_v7 }
  0x14   :  { %557 = vmatprep.subr.bf16.mxu0 %v603_v8  ;;  %584 = vmatprep.subr.bf16.mxu1 %v603_v8 }
  0x16   :  { %303 = vperm.xlu1 %597, %v249_v21   ;;  %298 = vperm.xlu0 %596, %v248_v22  }
  0x17   :  { %558 = vmatpush3.bf16.msra.mxu0 %v603_v8  ;;  %592 = vmatpush3.bf16.msra.mxu1 %v603_v8 }
  0x18   :  { %559 = vmatprep.subr.bf16.mxu0 %v604_v13  ;;  %585 = vmatprep.subr.bf16.mxu1 %v604_v13 }
  0x1a   :  { %313 = vperm.xlu1 %597, %v251_v25   ;;  %308 = vperm.xlu0 %596, %v250_v26  }
  0x1b   :  { %560 = vmatpush3.bf16.msra.mxu0 %v604_v13  ;;  %593 = vmatpush3.bf16.msra.mxu1 %v604_v13 }
  0x1c   :  { %561 = vmatprep.subr.bf16.mxu0 %v605_v16  ;;  %586 = vmatprep.subr.bf16.mxu1 %v605_v16 }
  0x1e   :  { %323 = vperm.xlu1 %597, %v253_v29   ;;  %318 = vperm.xlu0 %596, %v252_v30  }
  0x1f   :  { %562 = vmatpush3.bf16.msra.mxu0 %v605_v16  ;;  %594 = vmatpush3.bf16.msra.mxu1 %v605_v16 }
  0x22   :  { %564 = vmatmul.mubr.bf16.vlgmr.msra.gmra.mrb[0].mxu0 %v608_v19  ;;  %572 = vmatmul.mubr.bf16.vlgmr.msra.gmra.mrb[0].mxu1 %v609_v20 }
  0x23   :  { %567 = vmatprep.mubr.bf16.mxu0 %v610_v23  ;;  %575 = vmatprep.mubr.bf16.mxu1 %v611_v24 }
  0x24   :  { %333 = vperm.xlu1 %597, %v255_v31   ;;  %328 = vperm.xlu0 %596, %v254_v32  }
  0x2a   :  { %568 = vmatmul.mubr.bf16.gmra.mrb[4].mxu0 %v612_v27  ;;  %576 = vmatmul.mubr.bf16.gmra.mrb[4].mxu1 %v613_v28 }
  0x85   :  { %v269_v33 = vpop.permute.xlu1 %268  ;;  %v259_v34 = vpop.permute.xlu0 %258 }
  0x89   :  { %v274_v35 = vpop.permute.xlu1 %273  ;;  %v264_v36 = vpop.permute.xlu0 %263 }
  0x8d   :  { %v284_v37 = vpop.permute.xlu1 %283  ;;  %v279_v38 = vpop.permute.xlu0 %278 }
  0x91   :  { %v294_v39 = vpop.permute.xlu1 %293  ;;  %v289_v40 = vpop.permute.xlu0 %288 }
  0x95   :  { %v304_v41 = vpop.permute.xlu1 %303  ;;  %v299_v42 = vpop.permute.xlu0 %298 }
  0x99   :  { %v314_v43 = vpop.permute.xlu1 %313  ;;  %v309_v44 = vpop.permute.xlu0 %308 }
  0x9d   :  { %v324_v45 = vpop.permute.xlu1 %323  ;;  %v319_v46 = vpop.permute.xlu0 %318 }
  0xa3   :  { %v334_v3 = vpop.permute.xlu1 %333  ;;  %v329_v4 = vpop.permute.xlu0 %328 }
  0xf5   :  { %v565_v47 = vpop.f32.mrb[0].mxu0  ;;  %v573_v48 = vpop.f32.mrb[0].mxu1 }
  0xf6   :  { %v177_v49 = vpop.f32.mrb[1].mxu0  ;;  %v209_v50 = vpop.f32.mrb[1].mxu1  ;;  %v338_v53 = vmul.f32 %v565_v47, %v269_v33  ;;  %v346_v54 = vmul.f32 %v573_v48, %v309_v44 }
  0xf7   :  { %v566_v51 = vpop.f32.mrb[2].mxu0  ;;  %v574_v52 = vpop.f32.mrb[2].mxu1  ;;  %v336_v59 = vmul.f32 %v259_v34, %v177_v49  ;;  %v344_v60 = vmul.f32 %v299_v42, %v209_v50 }
  0xf8   :  { %v339_v55 = vmul.f32 %v566_v51, %v274_v35  ;;  %v347_v56 = vmul.f32 %v574_v52, %v314_v43  ;;  %v180_v57 = vpop.f32.mrb[3].mxu0  ;;  %v212_v58 = vpop.f32.mrb[3].mxu1 }
  0xf9   :  { %v337_v61 = vmul.f32 %v264_v36, %v180_v57  ;;  %v345_v62 = vmul.f32 %v304_v41, %v212_v58 }
  0xfa   :  { %v492_v63 = vpack.c.bf16 %v339_v55, %v338_v53  ;;  %v512_v0 = vpack.c.bf16 %v347_v56, %v346_v54 }
  0xfb   :  { %v487_v1 = vpack.c.bf16 %v337_v61, %v336_v59  ;;  %v507_v2 = vpack.c.bf16 %v345_v62, %v344_v60 }
  0xfc   :  { %524 = vst [vmem:[%s758_s3 + $0x8] sm:$0xff] %v492_v63   ;;  %528 = vst [vmem:[%s758_s3 + $0x28] sm:$0xff] %v512_v0  }
  0xfd   :  { %488 = vst [vmem:[%s758_s3] sm:$0xff] %v487_v1   ;;  %527 = vst [vmem:[%s758_s3 + $0x20] sm:$0xff] %v507_v2   ;;  %v569_v5 = vpop.f32.mrb[4].mxu0  ;;  %v577_v6 = vpop.f32.mrb[4].mxu1 }
  0xfe   :  { %v193_v7 = vpop.f32.mrb[5].mxu0  ;;  %v225_v8 = vpop.f32.mrb[5].mxu1  ;;  %v342_v11 = vmul.f32 %v569_v5, %v289_v40  ;;  %v350_v12 = vmul.f32 %v577_v6, %v329_v4 }
  0xff   :  { %v570_v9 = vpop.f32.mrb[6].mxu0  ;;  %v578_v10 = vpop.f32.mrb[6].mxu1  ;;  %v340_v17 = vmul.f32 %v279_v38, %v193_v7  ;;  %v348_v18 = vmul.f32 %v319_v46, %v225_v8 }
 0x100   :  { %v343_v13 = vmul.f32 %v570_v9, %v294_v39  ;;  %v351_v14 = vmul.f32 %v578_v10, %v334_v3  ;;  %v196_v15 = vpop.f32.mrb[7].mxu0  ;;  %v228_v16 = vpop.f32.mrb[7].mxu1 }
 0x101   :  { %v341_v19 = vmul.f32 %v284_v37, %v196_v15  ;;  %v349_v20 = vmul.f32 %v324_v45, %v228_v16 }
 0x102   :  { %v502_v21 = vpack.c.bf16 %v343_v13, %v342_v11  ;;  %v522_v22 = vpack.c.bf16 %v351_v14, %v350_v12 }
 0x103   :  { %v497_v23 = vpack.c.bf16 %v341_v19, %v340_v17  ;;  %v517_v24 = vpack.c.bf16 %v349_v20, %v348_v18 }
 0x104   :  { %526 = vst [vmem:[%s758_s3 + $0x18] sm:$0xff] %v502_v21   ;;  %530 = vst [vmem:[%s758_s3 + $0x38] sm:$0xff] %v522_v22  }
 0x105   :  { %525 = vst [vmem:[%s758_s3 + $0x10] sm:$0xff] %v497_v23   ;;  %529 = vst [vmem:[%s758_s3 + $0x30] sm:$0xff] %v517_v24  }

// kernel: gae_encoder_forward.5
= control target key start
LH: loop header
LB: loop body
LE: loop exit
PB: predicated region body
PF: predicated region fallthrough
CT: control target
= control target key end

     0   :  { %v919_v1 = vmov 0   ;;  %s1163_s1 = inlined_call_operand.vmem [shape: bf16[128,128], index: 1, kind: input, shape index: {}]   ;;  %s1164_s0 = inlined_call_operand.vmem [shape: s8[128,128], index: 0, kind: input, shape index: {}]   ;;  %s1165_s3 = inlined_call_operand.vmem [shape: f32[128,1], index: 3, kind: input, shape index: {}]   ;;  %s1166_s4 = inlined_call_operand.vmem [shape: bf16[128,128], index: 4, kind: input, shape index: {}]   ;;  %s1167_s2 = inlined_call_operand.vmem [shape: f32[1,128], index: 2, kind: input, shape index: {}]   ;;  %s1168_s5 = inlined_call_operand.vmem [shape: bf16[128,128], index: 5, kind: output, shape index: {}]  }
   0x1   :  { %v903_v0 = vld [vmem:[%s1163_s1] sm:$0xff]   ;;  %901 = vset.pattern.permute.xlu0 %v919_v1  ;;  %902 = vset.pattern.permute.xlu1 %v919_v1  ;;  %v904_v2 = vld [vmem:[%s1163_s1 + $0x8] sm:$0xff]   ;;  %v905_v3 = vld [vmem:[%s1163_s1 + $0x10] sm:$0xff]  }
   0x2   :  { %836 = vmatprep.subr.bf16.mxu0 %v903_v0  ;;  %v906_v4 = vld [vmem:[%s1163_s1 + $0x18] sm:$0xff]   ;;  %v41_v5 = vld [vmem:[%s1164_s0] sm:$0xff]  ;;  %v272_v8 = vld [vmem:[%s1165_s3 + $0x10] sm:$0xff] }
   0x3   :  { %837 = vmatpush3.bf16.msra.mxu0 %v903_v0  ;;  %v45_v6 = vunpack.c.l.s8.bf16 %v41_v5  ;;  %v270_v7 = vld [vmem:[%s1165_s3] sm:$0xff]  ;;  %314 = vperm.xlu1 %902, %v272_v8   ;;  %v271_v9 = vld [vmem:[%s1165_s3 + $0x8] sm:$0xff]  ;;  %v273_v10 = vld [vmem:[%s1165_s3 + $0x18] sm:$0xff]  ;;  %v46_v28 = vunpack.c.h.s8.bf16 %v41_v5 }
   0x4   :  { %838 = vmatprep.subr.bf16.mxu0 %v904_v2  ;;  %304 = vperm.xlu0 %901, %v270_v7   ;;  %v907_v11 = vld [vmem:[%s1163_s1 + $0x20] sm:$0xff]   ;;  %v275_v13 = vld [vmem:[%s1165_s3 + $0x28] sm:$0xff]  ;;  %v276_v15 = vld [vmem:[%s1165_s3 + $0x30] sm:$0xff] }
   0x5   :  { %852 = vmatprep.mubr.bf16.mxu0 %v45_v6  ;;  %v274_v12 = vld [vmem:[%s1165_s3 + $0x20] sm:$0xff]  ;;  %v908_v14 = vld [vmem:[%s1163_s1 + $0x28] sm:$0xff]   ;;  %v277_v16 = vld [vmem:[%s1165_s3 + $0x38] sm:$0xff] }
   0x6   :  { %v909_v17 = vld [vmem:[%s1163_s1 + $0x30] sm:$0xff]   ;;  %v911_v18 = vld [vmem:[%s1166_s4] sm:$0xff]   ;;  %v279_v20 = vld [vmem:[%s1165_s3 + $0x48] sm:$0xff] }
   0x7   :  { %839 = vmatpush3.bf16.msra.mxu0 %v904_v2  ;;  %319 = vperm.xlu1 %902, %v273_v10   ;;  %v278_v19 = vld [vmem:[%s1165_s3 + $0x40] sm:$0xff]  ;;  %v912_v21 = vld [vmem:[%s1166_s4 + $0x8] sm:$0xff]   ;;  %v910_v22 = vld [vmem:[%s1163_s1 + $0x38] sm:$0xff]  }
   0x8   :  { %840 = vmatprep.subr.bf16.mxu0 %v905_v3  ;;  %309 = vperm.xlu0 %901, %v271_v9   ;;  %v913_v23 = vld [vmem:[%s1166_s4 + $0x10] sm:$0xff]   ;;  %v281_v25 = vld [vmem:[%s1165_s3 + $0x58] sm:$0xff]  ;;  %v42_v26 = vld [vmem:[%s1164_s0 + $0x8] sm:$0xff] }
   0x9   :  { %868 = vmatprep.subr.bf16.mxu1 %v911_v18  ;;  %v280_v24 = vld [vmem:[%s1165_s3 + $0x50] sm:$0xff]  ;;  %v914_v27 = vld [vmem:[%s1166_s4 + $0x18] sm:$0xff]   ;;  %v47_v29 = vunpack.c.l.s8.bf16 %v42_v26  ;;  %v282_v30 = vld [vmem:[%s1165_s3 + $0x60] sm:$0xff]  ;;  %v48_v36 = vunpack.c.h.s8.bf16 %v42_v26 }
   0xa   :  { %869 = vmatpush3.bf16.msra.mxu1 %v911_v18  ;;  %v283_v31 = vld [vmem:[%s1165_s3 + $0x68] sm:$0xff]  ;;  %v915_v32 = vld [vmem:[%s1166_s4 + $0x20] sm:$0xff]   ;;  %v284_v33 = vld [vmem:[%s1165_s3 + $0x70] sm:$0xff] }
   0xb   :  { %841 = vmatpush3.bf16.msra.mxu0 %v905_v3  ;;  %329 = vperm.xlu1 %902, %v275_v13   ;;  %v43_v34 = vld [vmem:[%s1164_s0 + $0x10] sm:$0xff]  ;;  %v285_v35 = vld [vmem:[%s1165_s3 + $0x78] sm:$0xff]  ;;  %v916_v42 = vld [vmem:[%s1166_s4 + $0x28] sm:$0xff]  }
   0xc   :  { %842 = vmatprep.subr.bf16.mxu0 %v906_v4  ;;  %324 = vperm.xlu0 %901, %v274_v12   ;;  %v49_v37 = vunpack.c.l.s8.bf16 %v43_v34  ;;  %v44_v38 = vld [vmem:[%s1164_s0 + $0x18] sm:$0xff]  ;;  %v50_v39 = vunpack.c.h.s8.bf16 %v43_v34  ;;  %v917_v43 = vld [vmem:[%s1166_s4 + $0x30] sm:$0xff]   ;;  %v1075_v53 = vld [vmem:[%s1167_s2] ss:$0 sm:$0xff] }
   0xd   :  { %870 = vmatprep.subr.bf16.mxu1 %v912_v21  ;;  %v51_v40 = vunpack.c.l.s8.bf16 %v44_v38  ;;  %v52_v41 = vunpack.c.h.s8.bf16 %v44_v38  ;;  %v918_v44 = vld [vmem:[%s1166_s4 + $0x38] sm:$0xff]  }
   0xe   :  { %871 = vmatpush3.bf16.msra.mxu1 %v912_v21 }
   0xf   :  { %843 = vmatpush3.bf16.msra.mxu0 %v906_v4  ;;  %339 = vperm.xlu1 %902, %v277_v16  }
  0x10   :  { %844 = vmatprep.subr.bf16.mxu0 %v907_v11  ;;  %334 = vperm.xlu0 %901, %v276_v15  }
  0x11   :  { %872 = vmatprep.subr.bf16.mxu1 %v913_v23 }
  0x12   :  { %873 = vmatpush3.bf16.msra.mxu1 %v913_v23 }
  0x13   :  { %845 = vmatpush3.bf16.msra.mxu0 %v907_v11  ;;  %349 = vperm.xlu1 %902, %v279_v20  }
  0x14   :  { %846 = vmatprep.subr.bf16.mxu0 %v908_v14  ;;  %344 = vperm.xlu0 %901, %v278_v19  }
  0x15   :  { %874 = vmatprep.subr.bf16.mxu1 %v914_v27 }
  0x16   :  { %875 = vmatpush3.bf16.msra.mxu1 %v914_v27 }
  0x17   :  { %847 = vmatpush3.bf16.msra.mxu0 %v908_v14  ;;  %359 = vperm.xlu1 %902, %v281_v25  }
  0x18   :  { %848 = vmatprep.subr.bf16.mxu0 %v909_v17  ;;  %354 = vperm.xlu0 %901, %v280_v24  }
  0x19   :  { %876 = vmatprep.subr.bf16.mxu1 %v915_v32 }
  0x1a   :  { %877 = vmatpush3.bf16.msra.mxu1 %v915_v32 }
  0x1b   :  { %849 = vmatpush3.bf16.msra.mxu0 %v909_v17  ;;  %369 = vperm.xlu1 %902, %v283_v31  }
  0x1c   :  { %850 = vmatprep.subr.bf16.mxu0 %v910_v22  ;;  %364 = vperm.xlu0 %901, %v282_v30  }
  0x1d   :  { %878 = vmatprep.subr.bf16.mxu1 %v916_v42 }
  0x1e   :  { %879 = vmatpush3.bf16.msra.mxu1 %v916_v42 }
  0x1f   :  { %851 = vmatpush3.bf16.msra.mxu0 %v910_v22  ;;  %379 = vperm.xlu1 %902, %v285_v35  }
  0x20   :  { %374 = vperm.xlu0 %901, %v284_v33   ;;  %880 = vmatprep.subr.bf16.mxu1 %v917_v43 }
  0x22   :  { %853 = vmatmul.mubr.bf16.vlgmr.msra.gmra.mrb[0].mxu0 %v46_v28  ;;  %881 = vmatpush3.bf16.msra.mxu1 %v917_v43 }
  0x23   :  { %856 = vmatprep.mubr.bf16.mxu0 %v47_v29  ;;  %882 = vmatprep.subr.bf16.mxu1 %v918_v44 }
  0x26   :  { %883 = vmatpush3.bf16.msra.mxu1 %v918_v44 }
  0x2a   :  { %857 = vmatmul.mubr.bf16.gmra.mrb[4].mxu0 %v48_v36 }
  0x2b   :  { %860 = vmatprep.mubr.bf16.mxu0 %v49_v37 }
  0x32   :  { %861 = vmatmul.mubr.bf16.gmra.mrb[8].mxu0 %v50_v39 }
  0x33   :  { %864 = vmatprep.mubr.bf16.mxu0 %v51_v40 }
  0x3a   :  { %865 = vmatmul.mubr.bf16.gmra.mrb[12].mxu0 %v52_v41 }
  0x82   :  { %v1060_v46 = vpop.permute.xlu1 %314 }
  0x83   :  { %v1058_v45 = vpop.permute.xlu0 %304 }
  0x86   :  { %v1064_v48 = vpop.permute.xlu1 %319 }
  0x87   :  { %v1062_v47 = vpop.permute.xlu0 %309 }
  0x8a   :  { %v1068_v50 = vpop.permute.xlu1 %329 }
  0x8b   :  { %v1066_v49 = vpop.permute.xlu0 %324 }
  0x8e   :  { %v1078_v56 = vpop.permute.xlu1 %339 }
  0x8f   :  { %v1070_v51 = vpop.permute.xlu0 %334 }
  0x92   :  { %v1089_v5 = vpop.permute.xlu1 %349 }
  0x93   :  { %v1086_v1 = vpop.permute.xlu0 %344 }
  0x96   :  { %v1100_v22 = vpop.permute.xlu1 %359 }
  0x97   :  { %v1095_v18 = vpop.permute.xlu0 %354 }
  0x9a   :  { %v1109_v39 = vpop.permute.xlu1 %369 }
  0x9b   :  { %v1104_v32 = vpop.permute.xlu0 %364 }
  0xf5   :  { %v854_v52 = vpop.f32.mrb[0].mxu0 }
  0xf6   :  { %v384_v54 = vmul.f32 %v854_v52, %v1060_v46  ;;  %v172_v55 = vpop.f32.mrb[1].mxu0 }
  0xf7   :  { %v382_v57 = vmul.f32 %v1058_v45, %v172_v55  ;;  %v855_v58 = vpop.f32.mrb[2].mxu0 }
  0xf8   :  { %v407_v59 = vadd.f32 %v1075_v53, %v384_v54  ;;  %v385_v60 = vmul.f32 %v855_v58, %v1064_v48  ;;  %v175_v61 = vpop.f32.mrb[3].mxu0  ;;  %v1115_v54 = vpop.permute.xlu0 %374 }
  0xf9   :  { %v383_v62 = vmul.f32 %v1062_v47, %v175_v61  ;;  %v405_v63 = vadd.f32 %v1075_v53, %v382_v57 }
  0xfa   :  { %v408_v0 = vadd.f32 %v1075_v53, %v385_v60  ;;  %v423_v3 = vmax.f32 %v407_v59, 0.0 }
  0xfb   :  { %v406_v2 = vadd.f32 %v1075_v53, %v383_v62  ;;  %v421_v7 = vmax.f32 %v405_v63, 0.0  ;;  %v380_v62 = vpop.permute.xlu1 %379 }
  0xfc   :  { %v424_v4 = vmax.f32 %v408_v0, 0.0 }
  0xfd   :  { %v858_v6 = vpop.f32.mrb[4].mxu0  ;;  %v422_v8 = vmax.f32 %v406_v2, 0.0 }
  0xfe   :  { %v388_v9 = vmul.f32 %v858_v6, %v1070_v51  ;;  %v188_v10 = vpop.f32.mrb[5].mxu0  ;;  %v438_v11 = vpack.c.bf16 %v424_v4, %v423_v3 }
  0xff   :  { %v386_v12 = vmul.f32 %v1066_v49, %v188_v10  ;;  %v859_v13 = vpop.f32.mrb[6].mxu0  ;;  %v437_v14 = vpack.c.bf16 %v422_v8, %v421_v7 }
 0x100   :  { %v411_v15 = vadd.f32 %v1075_v53, %v388_v9  ;;  %v389_v16 = vmul.f32 %v859_v13, %v1078_v56  ;;  %v191_v17 = vpop.f32.mrb[7].mxu0 }
 0x101   :  { %v409_v19 = vadd.f32 %v1075_v53, %v386_v12  ;;  %v387_v20 = vmul.f32 %v1068_v50, %v191_v17  ;;  %884 = vmatprep.mubr.bf16.mxu1 %v437_v14 }
 0x102   :  { %v412_v21 = vadd.f32 %v1075_v53, %v389_v16  ;;  %885 = vmatmul.mubr.bf16.vlgmr.msra.gmra.mrb[0].mxu1 %v438_v11  ;;  %v427_v24 = vmax.f32 %v411_v15, 0.0 }
 0x103   :  { %v410_v23 = vadd.f32 %v1075_v53, %v387_v20  ;;  %v425_v26 = vmax.f32 %v409_v19, 0.0 }
 0x104   :  { %v428_v25 = vmax.f32 %v412_v21, 0.0 }
 0x105   :  { %v426_v27 = vmax.f32 %v410_v23, 0.0  ;;  %v862_v28 = vpop.f32.mrb[8].mxu0 }
 0x106   :  { %v392_v29 = vmul.f32 %v862_v28, %v1095_v18  ;;  %v204_v30 = vpop.f32.mrb[9].mxu0  ;;  %v440_v31 = vpack.c.bf16 %v428_v25, %v427_v24 }
 0x107   :  { %v390_v33 = vmul.f32 %v1086_v1, %v204_v30  ;;  %v863_v34 = vpop.f32.mrb[10].mxu0  ;;  %v439_v35 = vpack.c.bf16 %v426_v27, %v425_v26 }
 0x108   :  { %v415_v36 = vadd.f32 %v1075_v53, %v392_v29  ;;  %v393_v37 = vmul.f32 %v863_v34, %v1100_v22  ;;  %v207_v38 = vpop.f32.mrb[11].mxu0 }
 0x109   :  { %v413_v40 = vadd.f32 %v1075_v53, %v390_v33  ;;  %v391_v41 = vmul.f32 %v1089_v5, %v207_v38  ;;  %888 = vmatprep.mubr.bf16.mxu1 %v439_v35 }
 0x10a   :  { %v416_v42 = vadd.f32 %v1075_v53, %v393_v37  ;;  %889 = vmatmul.mubr.bf16.gmra.mrb[4].mxu1 %v440_v31  ;;  %v431_v44 = vmax.f32 %v415_v36, 0.0 }
 0x10b   :  { %v414_v43 = vadd.f32 %v1075_v53, %v391_v41  ;;  %v429_v55 = vmax.f32 %v413_v40, 0.0 }
 0x10c   :  { %v432_v52 = vmax.f32 %v416_v42, 0.0 }
 0x10d   :  { %v430_v57 = vmax.f32 %v414_v43, 0.0  ;;  %v866_v58 = vpop.f32.mrb[12].mxu0 }
 0x10e   :  { %v396_v59 = vmul.f32 %v866_v58, %v1115_v54  ;;  %v220_v60 = vpop.f32.mrb[13].mxu0  ;;  %v442_v61 = vpack.c.bf16 %v432_v52, %v431_v44 }
 0x10f   :  { %v394_v63 = vmul.f32 %v1104_v32, %v220_v60  ;;  %v867_v0 = vpop.f32.mrb[14].mxu0  ;;  %v441_v2 = vpack.c.bf16 %v430_v57, %v429_v55 }
 0x110   :  { %v419_v3 = vadd.f32 %v1075_v53, %v396_v59  ;;  %v397_v4 = vmul.f32 %v867_v0, %v380_v62  ;;  %v223_v6 = vpop.f32.mrb[15].mxu0 }
 0x111   :  { %v417_v7 = vadd.f32 %v1075_v53, %v394_v63  ;;  %v395_v8 = vmul.f32 %v1109_v39, %v223_v6  ;;  %892 = vmatprep.mubr.bf16.mxu1 %v441_v2 }
 0x112   :  { %v420_v9 = vadd.f32 %v1075_v53, %v397_v4  ;;  %893 = vmatmul.mubr.bf16.gmra.mrb[8].mxu1 %v442_v61  ;;  %v435_v11 = vmax.f32 %v419_v3, 0.0 }
 0x113   :  { %v418_v10 = vadd.f32 %v1075_v53, %v395_v8  ;;  %v433_v13 = vmax.f32 %v417_v7, 0.0 }
 0x114   :  { %v436_v12 = vmax.f32 %v420_v9, 0.0 }
 0x115   :  { %v434_v14 = vmax.f32 %v418_v10, 0.0 }
 0x116   :  { %v444_v15 = vpack.c.bf16 %v436_v12, %v435_v11 }
 0x117   :  { %v443_v16 = vpack.c.bf16 %v434_v14, %v433_v13 }
 0x119   :  { %896 = vmatprep.mubr.bf16.mxu1 %v443_v16 }
 0x11a   :  { %897 = vmatmul.mubr.bf16.gmra.mrb[12].mxu1 %v444_v15 }
 0x1d5   :  { %v886_v17 = vpop.f32.mrb[0].mxu1 }
 0x1d6   :  { %v543_v19 = vpop.f32.mrb[1].mxu1  ;;  %v608_v21 = vmul.f32 %v886_v17, %v1060_v46 }
 0x1d7   :  { %v887_v20 = vpop.f32.mrb[2].mxu1  ;;  %v606_v25 = vmul.f32 %v543_v19, %v1058_v45 }
 0x1d8   :  { %v609_v23 = vmul.f32 %v887_v20, %v1064_v48  ;;  %v546_v24 = vpop.f32.mrb[3].mxu1 }
 0x1d9   :  { %v607_v53 = vmul.f32 %v546_v24, %v1062_v47 }
 0x1da   :  { %v765_v26 = vpack.c.bf16 %v609_v23, %v608_v21 }
 0x1db   :  { %v760_v27 = vpack.c.bf16 %v607_v53, %v606_v25 }
 0x1dc   :  { %797 = vst [vmem:[%s1168_s5 + $0x8] sm:$0xff] %v765_v26  }
 0x1dd   :  { %761 = vst [vmem:[%s1168_s5] sm:$0xff] %v760_v27   ;;  %v890_v28 = vpop.f32.mrb[4].mxu1 }
 0x1de   :  { %v559_v29 = vpop.f32.mrb[5].mxu1  ;;  %v612_v48 = vmul.f32 %v890_v28, %v1070_v51 }
 0x1df   :  { %v891_v46 = vpop.f32.mrb[6].mxu1  ;;  %v610_v47 = vmul.f32 %v559_v29, %v1066_v49 }
 0x1e0   :  { %v613_v30 = vmul.f32 %v891_v46, %v1078_v56  ;;  %v562_v45 = vpop.f32.mrb[7].mxu1 }
 0x1e1   :  { %v611_v31 = vmul.f32 %v562_v45, %v1068_v50 }
 0x1e2   :  { %v775_v33 = vpack.c.bf16 %v613_v30, %v612_v48 }
 0x1e3   :  { %v770_v34 = vpack.c.bf16 %v611_v31, %v610_v47 }
 0x1e4   :  { %799 = vst [vmem:[%s1168_s5 + $0x18] sm:$0xff] %v775_v33  }
 0x1e5   :  { %798 = vst [vmem:[%s1168_s5 + $0x10] sm:$0xff] %v770_v34   ;;  %v894_v35 = vpop.f32.mrb[8].mxu1 }
 0x1e6   :  { %v575_v36 = vpop.f32.mrb[9].mxu1  ;;  %v616_v56 = vmul.f32 %v894_v35, %v1095_v18 }
 0x1e7   :  { %v895_v51 = vpop.f32.mrb[10].mxu1  ;;  %v614_v50 = vmul.f32 %v575_v36, %v1086_v1 }
 0x1e8   :  { %v617_v37 = vmul.f32 %v895_v51, %v1100_v22  ;;  %v578_v49 = vpop.f32.mrb[11].mxu1 }
 0x1e9   :  { %v615_v38 = vmul.f32 %v578_v49, %v1089_v5 }
 0x1ea   :  { %v785_v40 = vpack.c.bf16 %v617_v37, %v616_v56 }
 0x1eb   :  { %v780_v41 = vpack.c.bf16 %v615_v38, %v614_v50 }
 0x1ec   :  { %801 = vst [vmem:[%s1168_s5 + $0x28] sm:$0xff] %v785_v40  }
 0x1ed   :  { %800 = vst [vmem:[%s1168_s5 + $0x20] sm:$0xff] %v780_v41   ;;  %v898_v42 = vpop.f32.mrb[12].mxu1 }
 0x1ee   :  { %v591_v43 = vpop.f32.mrb[13].mxu1  ;;  %v620_v22 = vmul.f32 %v898_v42, %v1115_v54 }
 0x1ef   :  { %v899_v18 = vpop.f32.mrb[14].mxu1  ;;  %v618_v1 = vmul.f32 %v591_v43, %v1104_v32 }
 0x1f0   :  { %v621_v44 = vmul.f32 %v899_v18, %v380_v62  ;;  %v594_v52 = vpop.f32.mrb[15].mxu1 }
 0x1f1   :  { %v619_v5 = vmul.f32 %v594_v52, %v1109_v39 }
 0x1f2   :  { %v795_v55 = vpack.c.bf16 %v621_v44, %v620_v22 }
 0x1f3   :  { %v790_v57 = vpack.c.bf16 %v619_v5, %v618_v1 }
 0x1f4   :  { %803 = vst [vmem:[%s1168_s5 + $0x38] sm:$0xff] %v795_v55  }
 0x1f5   :  { %802 = vst [vmem:[%s1168_s5 + $0x30] sm:$0xff] %v790_v57  }

// kernel: gae_encoder_forward.7
= control target key start
LH: loop header
LB: loop body
LE: loop exit
PB: predicated region body
PF: predicated region fallthrough
CT: control target
= control target key end

     0   :  { %v524_v1 = vmov 0   ;;  %s696_s1 = inlined_call_operand.vmem [shape: bf16[128,128], index: 1, kind: input, shape index: {}]   ;;  %s697_s0 = inlined_call_operand.vmem [shape: s8[128,128], index: 0, kind: input, shape index: {}]   ;;  %s698_s3 = inlined_call_operand.vmem [shape: f32[128,1], index: 3, kind: input, shape index: {}]   ;;  %s699_s2 = inlined_call_operand.vmem [shape: f32[1,128], index: 2, kind: input, shape index: {}]   ;;  %s700_s4 = inlined_call_operand.vmem [shape: f32[128,128], index: 4, kind: output, shape index: {}]  }
   0x1   :  { %v516_v0 = vld [vmem:[%s696_s1] sm:$0xff]   ;;  %515 = vset.pattern.permute.xlu1 %v524_v1  ;;  %514 = vset.pattern.permute.xlu0 %v524_v1  ;;  %v517_v2 = vld [vmem:[%s696_s1 + $0x8] sm:$0xff]   ;;  %v518_v3 = vld [vmem:[%s696_s1 + $0x10] sm:$0xff]  }
   0x2   :  { %465 = vmatprep.subr.bf16.mxu0 %v516_v0  ;;  %497 = vmatprep.subr.bf16.mxu1 %v516_v0  ;;  %v519_v4 = vld [vmem:[%s696_s1 + $0x18] sm:$0xff]   ;;  %v565_v5 = vld [vmem:[%s697_s0] sm:$0xff]  ;;  %v570_v6 = vld [vmem:[%s697_s0 + $0x10] sm:$0xff] }
   0x3   :  { %466 = vmatpush3.bf16.msra.mxu0 %v516_v0  ;;  %505 = vmatpush3.bf16.msra.mxu1 %v516_v0  ;;  %v42_v7 = vunpack.c.l.s8.bf16 %v565_v5  ;;  %v46_v8 = vunpack.c.l.s8.bf16 %v570_v6  ;;  %v269_v9 = vld [vmem:[%s698_s3 + $0x10] sm:$0xff]  ;;  %v267_v10 = vld [vmem:[%s698_s3] sm:$0xff]  ;;  %v270_v11 = vld [vmem:[%s698_s3 + $0x18] sm:$0xff]  ;;  %v43_v27 = vunpack.c.h.s8.bf16 %v565_v5  ;;  %v47_v28 = vunpack.c.h.s8.bf16 %v570_v6 }
   0x4   :  { %467 = vmatprep.subr.bf16.mxu0 %v517_v2  ;;  %498 = vmatprep.subr.bf16.mxu1 %v517_v2  ;;  %v268_v12 = vld [vmem:[%s698_s3 + $0x8] sm:$0xff]  ;;  %v520_v13 = vld [vmem:[%s696_s1 + $0x20] sm:$0xff]   ;;  %v274_v17 = vld [vmem:[%s698_s3 + $0x38] sm:$0xff] }
   0x5   :  { %311 = vperm.xlu1 %515, %v269_v9   ;;  %301 = vperm.xlu0 %514, %v267_v10   ;;  %v272_v14 = vld [vmem:[%s698_s3 + $0x28] sm:$0xff]  ;;  %v271_v15 = vld [vmem:[%s698_s3 + $0x20] sm:$0xff]  ;;  %v273_v18 = vld [vmem:[%s698_s3 + $0x30] sm:$0xff] }
   0x6   :  { %481 = vmatprep.mubr.bf16.mxu0 %v42_v7  ;;  %489 = vmatprep.mubr.bf16.mxu1 %v46_v8  ;;  %v521_v16 = vld [vmem:[%s696_s1 + $0x28] sm:$0xff]   ;;  %v522_v19 = vld [vmem:[%s696_s1 + $0x30] sm:$0xff]   ;;  %v275_v21 = vld [vmem:[%s698_s3 + $0x40] sm:$0xff] }
   0x7   :  { %468 = vmatpush3.bf16.msra.mxu0 %v517_v2  ;;  %506 = vmatpush3.bf16.msra.mxu1 %v517_v2  ;;  %v276_v20 = vld [vmem:[%s698_s3 + $0x48] sm:$0xff]  ;;  %v523_v22 = vld [vmem:[%s696_s1 + $0x38] sm:$0xff]   ;;  %v277_v24 = vld [vmem:[%s698_s3 + $0x50] sm:$0xff] }
   0x8   :  { %469 = vmatprep.subr.bf16.mxu0 %v518_v3  ;;  %499 = vmatprep.subr.bf16.mxu1 %v518_v3  ;;  %v278_v23 = vld [vmem:[%s698_s3 + $0x58] sm:$0xff]  ;;  %v39_v25 = vld [vmem:[%s697_s0 + $0x8] sm:$0xff]  ;;  %v279_v32 = vld [vmem:[%s698_s3 + $0x60] sm:$0xff] }
   0x9   :  { %316 = vperm.xlu1 %515, %v270_v11   ;;  %306 = vperm.xlu0 %514, %v268_v12   ;;  %v41_v26 = vld [vmem:[%s697_s0 + $0x18] sm:$0xff]  ;;  %v44_v29 = vunpack.c.l.s8.bf16 %v39_v25  ;;  %v280_v31 = vld [vmem:[%s698_s3 + $0x68] sm:$0xff]  ;;  %v281_v34 = vld [vmem:[%s698_s3 + $0x70] sm:$0xff]  ;;  %v45_v35 = vunpack.c.h.s8.bf16 %v39_v25 }
   0xa   :  { %v48_v30 = vunpack.c.l.s8.bf16 %v41_v26  ;;  %v282_v33 = vld [vmem:[%s698_s3 + $0x78] sm:$0xff]  ;;  %v49_v36 = vunpack.c.h.s8.bf16 %v41_v26  ;;  %v448_v52 = vld [vmem:[%s699_s2] ss:$0 sm:$0xff] }
   0xb   :  { %470 = vmatpush3.bf16.msra.mxu0 %v518_v3  ;;  %507 = vmatpush3.bf16.msra.mxu1 %v518_v3 }
   0xc   :  { %471 = vmatprep.subr.bf16.mxu0 %v519_v4  ;;  %500 = vmatprep.subr.bf16.mxu1 %v519_v4 }
   0xd   :  { %326 = vperm.xlu1 %515, %v272_v14   ;;  %321 = vperm.xlu0 %514, %v271_v15  }
   0xf   :  { %472 = vmatpush3.bf16.msra.mxu0 %v519_v4  ;;  %508 = vmatpush3.bf16.msra.mxu1 %v519_v4 }
  0x10   :  { %473 = vmatprep.subr.bf16.mxu0 %v520_v13  ;;  %501 = vmatprep.subr.bf16.mxu1 %v520_v13 }
  0x11   :  { %336 = vperm.xlu1 %515, %v274_v17   ;;  %331 = vperm.xlu0 %514, %v273_v18  }
  0x13   :  { %474 = vmatpush3.bf16.msra.mxu0 %v520_v13  ;;  %509 = vmatpush3.bf16.msra.mxu1 %v520_v13 }
  0x14   :  { %475 = vmatprep.subr.bf16.mxu0 %v521_v16  ;;  %502 = vmatprep.subr.bf16.mxu1 %v521_v16 }
  0x15   :  { %346 = vperm.xlu1 %515, %v276_v20   ;;  %341 = vperm.xlu0 %514, %v275_v21  }
  0x17   :  { %476 = vmatpush3.bf16.msra.mxu0 %v521_v16  ;;  %510 = vmatpush3.bf16.msra.mxu1 %v521_v16 }
  0x18   :  { %477 = vmatprep.subr.bf16.mxu0 %v522_v19  ;;  %503 = vmatprep.subr.bf16.mxu1 %v522_v19 }
  0x19   :  { %356 = vperm.xlu1 %515, %v278_v23   ;;  %351 = vperm.xlu0 %514, %v277_v24  }
  0x1b   :  { %478 = vmatpush3.bf16.msra.mxu0 %v522_v19  ;;  %511 = vmatpush3.bf16.msra.mxu1 %v522_v19 }
  0x1c   :  { %479 = vmatprep.subr.bf16.mxu0 %v523_v22  ;;  %504 = vmatprep.subr.bf16.mxu1 %v523_v22 }
  0x1d   :  { %366 = vperm.xlu1 %515, %v280_v31   ;;  %361 = vperm.xlu0 %514, %v279_v32  }
  0x1f   :  { %480 = vmatpush3.bf16.msra.mxu0 %v523_v22  ;;  %512 = vmatpush3.bf16.msra.mxu1 %v523_v22 }
  0x21   :  { %376 = vperm.xlu1 %515, %v282_v33   ;;  %371 = vperm.xlu0 %514, %v281_v34  }
  0x22   :  { %482 = vmatmul.mubr.bf16.vlgmr.msra.gmra.mrb[0].mxu0 %v43_v27  ;;  %490 = vmatmul.mubr.bf16.vlgmr.msra.gmra.mrb[0].mxu1 %v47_v28 }
  0x23   :  { %485 = vmatprep.mubr.bf16.mxu0 %v44_v29  ;;  %493 = vmatprep.mubr.bf16.mxu1 %v48_v30 }
  0x2a   :  { %486 = vmatmul.mubr.bf16.gmra.mrb[4].mxu0 %v45_v35  ;;  %494 = vmatmul.mubr.bf16.gmra.mrb[4].mxu1 %v49_v36 }
  0x84   :  { %v312_v37 = vpop.permute.xlu1 %311  ;;  %v302_v38 = vpop.permute.xlu0 %301 }
  0x88   :  { %v317_v39 = vpop.permute.xlu1 %316  ;;  %v307_v40 = vpop.permute.xlu0 %306 }
  0x8c   :  { %v642_v41 = vpop.permute.xlu1 %326  ;;  %v322_v42 = vpop.permute.xlu0 %321 }
  0x90   :  { %v337_v43 = vpop.permute.xlu1 %336  ;;  %v332_v44 = vpop.permute.xlu0 %331 }
  0x94   :  { %v347_v45 = vpop.permute.xlu1 %346  ;;  %v342_v46 = vpop.permute.xlu0 %341 }
  0x98   :  { %v357_v47 = vpop.permute.xlu1 %356  ;;  %v352_v48 = vpop.permute.xlu0 %351 }
  0x9c   :  { %v367_v49 = vpop.permute.xlu1 %366  ;;  %v362_v50 = vpop.permute.xlu0 %361 }
  0xa0   :  { %v377_v12 = vpop.permute.xlu1 %376  ;;  %v372_v13 = vpop.permute.xlu0 %371 }
  0xf5   :  { %v483_v51 = vpop.f32.mrb[0].mxu0  ;;  %v491_v53 = vpop.f32.mrb[0].mxu1 }
  0xf6   :  { %v381_v54 = vmul.f32 %v483_v51, %v312_v37  ;;  %v389_v55 = vmul.f32 %v491_v53, %v352_v48  ;;  %v169_v56 = vpop.f32.mrb[1].mxu0  ;;  %v201_v57 = vpop.f32.mrb[1].mxu1 }
  0xf7   :  { %v379_v58 = vmul.f32 %v302_v38, %v169_v56  ;;  %v387_v59 = vmul.f32 %v342_v46, %v201_v57  ;;  %v484_v60 = vpop.f32.mrb[2].mxu0  ;;  %v492_v61 = vpop.f32.mrb[2].mxu1 }
  0xf8   :  { %v404_v62 = vadd.f32 %v448_v52, %v381_v54  ;;  %v412_v63 = vadd.f32 %v448_v52, %v389_v55  ;;  %v382_v0 = vmul.f32 %v484_v60, %v317_v39  ;;  %v390_v1 = vmul.f32 %v492_v61, %v357_v47  ;;  %v172_v2 = vpop.f32.mrb[3].mxu0  ;;  %v204_v3 = vpop.f32.mrb[3].mxu1 }
  0xf9   :  { %v402_v4 = vadd.f32 %v448_v52, %v379_v58  ;;  %v410_v5 = vadd.f32 %v448_v52, %v387_v59  ;;  %v380_v6 = vmul.f32 %v307_v40, %v172_v2  ;;  %v388_v7 = vmul.f32 %v347_v45, %v204_v3 }
  0xfa   :  { %420 = vst [vmem:[%s700_s4 + $0x10] sm:$0xff] %v404_v62  ;;  %428 = vst [vmem:[%s700_s4 + $0x50] sm:$0xff] %v412_v63  ;;  %v405_v8 = vadd.f32 %v448_v52, %v382_v0  ;;  %v413_v9 = vadd.f32 %v448_v52, %v390_v1 }
  0xfb   :  { %418 = vst [vmem:[%s700_s4] sm:$0xff] %v402_v4  ;;  %426 = vst [vmem:[%s700_s4 + $0x40] sm:$0xff] %v410_v5  ;;  %v403_v10 = vadd.f32 %v448_v52, %v380_v6  ;;  %v411_v11 = vadd.f32 %v448_v52, %v388_v7 }
  0xfc   :  { %421 = vst [vmem:[%s700_s4 + $0x18] sm:$0xff] %v405_v8  ;;  %429 = vst [vmem:[%s700_s4 + $0x58] sm:$0xff] %v413_v9 }
  0xfd   :  { %419 = vst [vmem:[%s700_s4 + $0x8] sm:$0xff] %v403_v10  ;;  %427 = vst [vmem:[%s700_s4 + $0x48] sm:$0xff] %v411_v11  ;;  %v487_v14 = vpop.f32.mrb[4].mxu0  ;;  %v495_v15 = vpop.f32.mrb[4].mxu1 }
  0xfe   :  { %v385_v16 = vmul.f32 %v487_v14, %v332_v44  ;;  %v393_v17 = vmul.f32 %v495_v15, %v372_v13  ;;  %v185_v18 = vpop.f32.mrb[5].mxu0  ;;  %v217_v19 = vpop.f32.mrb[5].mxu1 }
  0xff   :  { %v383_v20 = vmul.f32 %v322_v42, %v185_v18  ;;  %v391_v21 = vmul.f32 %v362_v50, %v217_v19  ;;  %v488_v22 = vpop.f32.mrb[6].mxu0  ;;  %v496_v23 = vpop.f32.mrb[6].mxu1 }
 0x100   :  { %v408_v24 = vadd.f32 %v448_v52, %v385_v16  ;;  %v416_v25 = vadd.f32 %v448_v52, %v393_v17  ;;  %v386_v26 = vmul.f32 %v488_v22, %v337_v43  ;;  %v394_v27 = vmul.f32 %v496_v23, %v377_v12  ;;  %v188_v28 = vpop.f32.mrb[7].mxu0  ;;  %v220_v29 = vpop.f32.mrb[7].mxu1 }
 0x101   :  { %v406_v30 = vadd.f32 %v448_v52, %v383_v20  ;;  %v414_v31 = vadd.f32 %v448_v52, %v391_v21  ;;  %v384_v32 = vmul.f32 %v642_v41, %v188_v28  ;;  %v392_v33 = vmul.f32 %v367_v49, %v220_v29 }
 0x102   :  { %424 = vst [vmem:[%s700_s4 + $0x30] sm:$0xff] %v408_v24  ;;  %432 = vst [vmem:[%s700_s4 + $0x70] sm:$0xff] %v416_v25  ;;  %v409_v34 = vadd.f32 %v448_v52, %v386_v26  ;;  %v417_v35 = vadd.f32 %v448_v52, %v394_v27 }
 0x103   :  { %422 = vst [vmem:[%s700_s4 + $0x20] sm:$0xff] %v406_v30  ;;  %430 = vst [vmem:[%s700_s4 + $0x60] sm:$0xff] %v414_v31  ;;  %v407_v36 = vadd.f32 %v448_v52, %v384_v32  ;;  %v415_v37 = vadd.f32 %v448_v52, %v392_v33 }
 0x104   :  { %425 = vst [vmem:[%s700_s4 + $0x38] sm:$0xff] %v409_v34  ;;  %433 = vst [vmem:[%s700_s4 + $0x78] sm:$0xff] %v417_v35 }
 0x105   :  { %423 = vst [vmem:[%s700_s4 + $0x28] sm:$0xff] %v407_v36  ;;  %431 = vst [vmem:[%s700_s4 + $0x68] sm:$0xff] %v415_v37 }

</bundles_post_ra>
